<compile_context>
chip_gen: v7x
topology: tpu7x:2x2x1
jax: 0.10.0
libtpu: 0.0.40
codegen_flags: <defaults>
</compile_context>

<pallas_src>
import functools

import jax
import jax.numpy as jnp
from jax.experimental import pallas as pl
from jax.experimental.pallas import tpu as pltpu

NEG_SLOPE = 0.2
BN_EPS = 1e-5
TILE_B_MAX = 512   # rows per grid step; sized well inside v7x's 64 MiB VMEM


def _leaky_relu(x):
    return jnp.where(x > 0, x, NEG_SLOPE * x)


def _classifier_kernel(x_ref,
                       w1_ref, sh1_ref,
                       w2_ref, sh2_ref,
                       w3_ref, b3_ref,
                       out_ref):
    # --- mlp1: (Linear + BN folded into W/shift) -> LeakyReLU ---
    h1 = jnp.dot(x_ref[...], w1_ref[...], preferred_element_type=jnp.float32)
    h1 = _leaky_relu(h1 + sh1_ref[...])
    # Dropout(p=0.5) -> identity (eval mode)

    # --- mlp2: (Linear + BN folded) -> LeakyReLU ---
    h2 = jnp.dot(h1.astype(jnp.bfloat16), w2_ref[...],
                 preferred_element_type=jnp.float32)
    h2 = _leaky_relu(h2 + sh2_ref[...])
    # Dropout(p=0.5) -> identity (eval mode)

    # --- mlp3: Linear (logits, no activation), lane-dense padded N ---
    logits = jnp.dot(h2.astype(jnp.bfloat16), w3_ref[...],
                     preferred_element_type=jnp.float32)
    out_ref[...] = (logits + b3_ref[...]).astype(out_ref.dtype)


def _fold_bn(gamma, beta, mean, var):
    scale = gamma / jnp.sqrt(var + BN_EPS)
    shift = beta - mean * scale
    return scale, shift


@functools.partial(jax.jit, static_argnames=("tile_b",))
def class_classifier_forward(x, params, *, tile_b=None):
    """x: [B, input_dim] float32.  params: dict of weights (see init_params)."""
    B, input_dim = x.shape
    num_class = params["w3"].shape[1]

    # ---- fold BN (eval mode) into the Linear weights / shifts (one-time XLA ops) ----
    s1, t1 = _fold_bn(params["bn1_gamma"], params["bn1_beta"],
                      params["bn1_mean"], params["bn1_var"])
    s2, t2 = _fold_bn(params["bn2_gamma"], params["bn2_beta"],
                      params["bn2_mean"], params["bn2_var"])

    w1 = (params["w1"] * s1[None, :]).astype(jnp.bfloat16)        # [in, 512]
    sh1 = (params["b1"] * s1 + t1)[None, :].astype(jnp.float32)   # [1, 512]
    w2 = (params["w2"] * s2[None, :]).astype(jnp.bfloat16)        # [512, 256]
    sh2 = (params["b2"] * s2 + t2)[None, :].astype(jnp.float32)   # [1, 256]

    # ---- pad the class dim up to a multiple of 128 for lane-dense stores ----
    n_pad = pl.cdiv(num_class, 128) * 128
    w3 = jnp.zeros((params["w3"].shape[0], n_pad), jnp.float32)
    w3 = w3.at[:, :num_class].set(params["w3"]).astype(jnp.bfloat16)   # [256, n_pad]
    b3 = jnp.zeros((1, n_pad), jnp.float32).at[0, :num_class].set(params["b3"])

    d1 = w1.shape[1]
    d2 = w2.shape[1]

    # ---- choose batch tile (multiple of 8 sublanes), pad batch to a tile multiple ----
    if tile_b is None:
        tile_b = min(TILE_B_MAX, max(8, ((B + 7) // 8) * 8))
    b_pad = pl.cdiv(B, tile_b) * tile_b
    if b_pad != B:
        x = jnp.pad(x, ((0, b_pad - B), (0, 0)))
    x_bf = x.astype(jnp.bfloat16)

    grid = (b_pad // tile_b,)

    in_specs = [
        pl.BlockSpec((tile_b, input_dim), lambda i: (i, 0)),   # x tile (streamed)
        pl.BlockSpec((input_dim, d1), lambda i: (0, 0)),       # w1  (VMEM-resident)
        pl.BlockSpec((1, d1), lambda i: (0, 0)),               # shift1
        pl.BlockSpec((d1, d2), lambda i: (0, 0)),              # w2
        pl.BlockSpec((1, d2), lambda i: (0, 0)),               # shift2
        pl.BlockSpec((d2, n_pad), lambda i: (0, 0)),           # w3 (padded N)
        pl.BlockSpec((1, n_pad), lambda i: (0, 0)),            # b3 (padded N)
    ]
    out_spec = pl.BlockSpec((tile_b, n_pad), lambda i: (i, 0))

    out_padded = pl.pallas_call(
        _classifier_kernel,
        out_shape=jax.ShapeDtypeStruct((b_pad, n_pad), jnp.float32),
        grid=grid,
        in_specs=in_specs,
        out_specs=out_spec,
        compiler_params=pltpu.CompilerParams(
            dimension_semantics=("parallel",)),
    )(x_bf, w1, sh1, w2, sh2, w3, b3)

    return out_padded[:B, :num_class]


def init_params(key, input_dim, num_class):
    """Deterministic init mimicking PyTorch defaults (uniform +/- 1/sqrt(fan_in));
    BN running stats start at mean=0, var=1, gamma/beta perturbed so BN is non-trivial."""
    ks = jax.random.split(key, 10)

    def linear(kw, kb, fan_in, fan_out):
        bound = 1.0 / jnp.sqrt(fan_in)
        # Stored as [in, out] (PyTorch weight transposed) so the kernel does x @ W.
        w = jax.random.uniform(kw, (fan_in, fan_out), jnp.float32, -bound, bound)
        b = jax.random.uniform(kb, (fan_out,), jnp.float32, -bound, bound)
        return w, b

    w1, b1 = linear(ks[0], ks[1], input_dim, 512)
    w2, b2 = linear(ks[2], ks[3], 512, 256)
    w3, b3 = linear(ks[4], ks[5], 256, num_class)

    bn1_gamma = 1.0 + 0.1 * jax.random.normal(ks[6], (512,), jnp.float32)
    bn1_beta = 0.1 * jax.random.normal(ks[7], (512,), jnp.float32)
    bn1_mean = jnp.zeros((512,), jnp.float32)
    bn1_var = jnp.ones((512,), jnp.float32)

    bn2_gamma = 1.0 + 0.1 * jax.random.normal(ks[8], (256,), jnp.float32)
    bn2_beta = 0.1 * jax.random.normal(ks[9], (256,), jnp.float32)
    bn2_mean = jnp.zeros((256,), jnp.float32)
    bn2_var = jnp.ones((256,), jnp.float32)

    return dict(
        w1=w1, b1=b1, w2=w2, b2=b2, w3=w3, b3=b3,
        bn1_gamma=bn1_gamma, bn1_beta=bn1_beta, bn1_mean=bn1_mean, bn1_var=bn1_var,
        bn2_gamma=bn2_gamma, bn2_beta=bn2_beta, bn2_mean=bn2_mean, bn2_var=bn2_var,
    )


def reference_forward_bf16(x, params):
    """Pure-JAX reference with the SAME bf16-operand / f32-accumulate arithmetic
    as the kernel (tight comparison)."""
    s1, t1 = _fold_bn(params["bn1_gamma"], params["bn1_beta"],
                      params["bn1_mean"], params["bn1_var"])
    s2, t2 = _fold_bn(params["bn2_gamma"], params["bn2_beta"],
                      params["bn2_mean"], params["bn2_var"])
    w1 = (params["w1"] * s1[None, :]).astype(jnp.bfloat16)
    sh1 = params["b1"] * s1 + t1
    w2 = (params["w2"] * s2[None, :]).astype(jnp.bfloat16)
    sh2 = params["b2"] * s2 + t2
    w3 = params["w3"].astype(jnp.bfloat16)
    b3 = params["b3"]

    h1 = jnp.dot(x.astype(jnp.bfloat16), w1, preferred_element_type=jnp.float32) + sh1
    h1 = _leaky_relu(h1)
    h2 = jnp.dot(h1.astype(jnp.bfloat16), w2, preferred_element_type=jnp.float32) + sh2
    h2 = _leaky_relu(h2)
    return jnp.dot(h2.astype(jnp.bfloat16), w3, preferred_element_type=jnp.float32) + b3


def reference_forward_f32(x, params):
    """Full-precision f32 reference of the eval-mode forward."""
    s1, t1 = _fold_bn(params["bn1_gamma"], params["bn1_beta"],
                      params["bn1_mean"], params["bn1_var"])
    s2, t2 = _fold_bn(params["bn2_gamma"], params["bn2_beta"],
                      params["bn2_mean"], params["bn2_var"])
    h1 = _leaky_relu((x @ params["w1"] + params["b1"]) * s1 + t1)
    h2 = _leaky_relu((h1 @ params["w2"] + params["b2"]) * s2 + t2)
    return h2 @ params["w3"] + params["b3"]


if __name__ == "__main__":
    B, INPUT_DIM, NUM_CLASS = 8, 128, 10

    key = jax.random.PRNGKey(0)
    kx, kp = jax.random.split(key)
    x = jax.random.normal(kx, (B, INPUT_DIM), jnp.float32)
    params = init_params(kp, INPUT_DIM, NUM_CLASS)

    logits = class_classifier_forward(x, params)
    logits = jax.block_until_ready(logits)
    assert logits.shape == (B, NUM_CLASS)

    # Tight check vs a reference doing identical bf16-operand / f32-accum math.
    ref_bf16 = reference_forward_bf16(x, params)
    assert jnp.allclose(logits, ref_bf16, atol=2e-3, rtol=2e-3), (
        jnp.max(jnp.abs(logits - ref_bf16)))

    # Loose sanity check vs the full f32 reference (bf16 quantization tolerance).
    ref_f32 = reference_forward_f32(x, params)
    assert jnp.allclose(logits, ref_f32, atol=1e-1, rtol=1e-1), (
        jnp.max(jnp.abs(logits - ref_f32)))

    print("KERNEL_OK")
</pallas_src>

<mosaic_0001>
module attributes {stable_mosaic.version = 11 : i64} {
  func.func @_classifier_kernel(%arg0: i32, %arg1: memref<8x128xbf16, #tpu.memory_space<vmem>>, %arg2: memref<128x512xbf16, #tpu.memory_space<vmem>>, %arg3: memref<1x512xf32, #tpu.memory_space<vmem>>, %arg4: memref<512x256xbf16, #tpu.memory_space<vmem>>, %arg5: memref<1x256xf32, #tpu.memory_space<vmem>>, %arg6: memref<256x128xbf16, #tpu.memory_space<vmem>>, %arg7: memref<1x128xf32, #tpu.memory_space<vmem>>, %arg8: memref<8x128xf32, #tpu.memory_space<vmem>>) attributes {dimension_semantics = [#tpu.dimension_semantics<parallel>], iteration_bounds = array<i64: 1>, scalar_prefetch = 0 : i64, scratch_operands = 0 : i64, tpu.core_type = #tpu.core_type<tc>, window_params = [{transform_indices = @transform_0, window_bounds = array<i64: 8, 128>}, {pipeline_mode = #tpu.pipeline_mode<synchronous>, transform_indices = @transform_1, window_bounds = array<i64: 128, 512>}, {pipeline_mode = #tpu.pipeline_mode<synchronous>, transform_indices = @transform_2, window_bounds = array<i64: 1, 512>}, {pipeline_mode = #tpu.pipeline_mode<synchronous>, transform_indices = @transform_3, window_bounds = array<i64: 512, 256>}, {pipeline_mode = #tpu.pipeline_mode<synchronous>, transform_indices = @transform_4, window_bounds = array<i64: 1, 256>}, {pipeline_mode = #tpu.pipeline_mode<synchronous>, transform_indices = @transform_5, window_bounds = array<i64: 256, 128>}, {pipeline_mode = #tpu.pipeline_mode<synchronous>, transform_indices = @transform_6, window_bounds = array<i64: 1, 128>}, {transform_indices = @transform_7, window_bounds = array<i64: 8, 128>}]} {
    %c0 = arith.constant 0 : index
    %c0_0 = arith.constant 0 : index
    %0 = vector.load %arg1[%c0, %c0_0] : memref<8x128xbf16, #tpu.memory_space<vmem>>, vector<8x128xbf16>
    %c0_1 = arith.constant 0 : index
    %c0_2 = arith.constant 0 : index
    %1 = vector.load %arg2[%c0_1, %c0_2] : memref<128x512xbf16, #tpu.memory_space<vmem>>, vector<128x512xbf16>
    %cst = arith.constant dense<0.000000e+00> : vector<8x512xf32>
    %2 = tpu.matmul %0, %1, %cst {dimension_numbers = #tpu.dot_dimension_numbers<[1], [0], [0], [1], [0, 0, 1, 1], [], []>} : vector<8x128xbf16>, vector<128x512xbf16>, vector<8x512xf32> -> vector<8x512xf32>
    %c0_3 = arith.constant 0 : index
    %c0_4 = arith.constant 0 : index
    %3 = vector.load %arg3[%c0_3, %c0_4] : memref<1x512xf32, #tpu.memory_space<vmem>>, vector<1x512xf32>
    %4 = vector.broadcast %3 : vector<1x512xf32> to vector<8x512xf32>
    %5 = arith.addf %2, %4 : vector<8x512xf32>
    %cst_5 = arith.constant 0.000000e+00 : f32
    %6 = vector.broadcast %cst_5 : f32 to vector<8x512xf32>
    %7 = arith.cmpf ogt, %5, %6 : vector<8x512xf32>
    %cst_6 = arith.constant 2.000000e-01 : f32
    %8 = vector.broadcast %cst_6 : f32 to vector<8x512xf32>
    %9 = arith.mulf %8, %5 : vector<8x512xf32>
    %10 = arith.select %7, %5, %9 : vector<8x512xi1>, vector<8x512xf32>
    %11 = arith.truncf %10 : vector<8x512xf32> to vector<8x512xbf16>
    %c0_7 = arith.constant 0 : index
    %c0_8 = arith.constant 0 : index
    %12 = vector.load %arg4[%c0_7, %c0_8] : memref<512x256xbf16, #tpu.memory_space<vmem>>, vector<512x256xbf16>
    %cst_9 = arith.constant dense<0.000000e+00> : vector<8x256xf32>
    %13 = tpu.matmul %11, %12, %cst_9 {dimension_numbers = #tpu.dot_dimension_numbers<[1], [0], [0], [1], [0, 0, 1, 1], [], []>} : vector<8x512xbf16>, vector<512x256xbf16>, vector<8x256xf32> -> vector<8x256xf32>
    %c0_10 = arith.constant 0 : index
    %c0_11 = arith.constant 0 : index
    %14 = vector.load %arg5[%c0_10, %c0_11] : memref<1x256xf32, #tpu.memory_space<vmem>>, vector<1x256xf32>
    %15 = vector.broadcast %14 : vector<1x256xf32> to vector<8x256xf32>
    %16 = arith.addf %13, %15 : vector<8x256xf32>
    %cst_12 = arith.constant 0.000000e+00 : f32
    %17 = vector.broadcast %cst_12 : f32 to vector<8x256xf32>
    %18 = arith.cmpf ogt, %16, %17 : vector<8x256xf32>
    %cst_13 = arith.constant 2.000000e-01 : f32
    %19 = vector.broadcast %cst_13 : f32 to vector<8x256xf32>
    %20 = arith.mulf %19, %16 : vector<8x256xf32>
    %21 = arith.select %18, %16, %20 : vector<8x256xi1>, vector<8x256xf32>
    %22 = arith.truncf %21 : vector<8x256xf32> to vector<8x256xbf16>
    %c0_14 = arith.constant 0 : index
    %c0_15 = arith.constant 0 : index
    %23 = vector.load %arg6[%c0_14, %c0_15] : memref<256x128xbf16, #tpu.memory_space<vmem>>, vector<256x128xbf16>
    %cst_16 = arith.constant dense<0.000000e+00> : vector<8x128xf32>
    %24 = tpu.matmul %22, %23, %cst_16 {dimension_numbers = #tpu.dot_dimension_numbers<[1], [0], [0], [1], [0, 0, 1, 1], [], []>} : vector<8x256xbf16>, vector<256x128xbf16>, vector<8x128xf32> -> vector<8x128xf32>
    %c0_17 = arith.constant 0 : index
    %c0_18 = arith.constant 0 : index
    %25 = vector.load %arg7[%c0_17, %c0_18] : memref<1x128xf32, #tpu.memory_space<vmem>>, vector<1x128xf32>
    %26 = vector.broadcast %25 : vector<1x128xf32> to vector<8x128xf32>
    %27 = arith.addf %24, %26 : vector<8x128xf32>
    %c0_19 = arith.constant 0 : index
    %c0_20 = arith.constant 0 : index
    %28 = vector.load %arg8[%c0_19, %c0_20] : memref<8x128xf32, #tpu.memory_space<vmem>>, vector<8x128xf32>
    tpu.vector_store %arg8[%c0_19, %c0_20], %27 {strides = array<i32>} : memref<8x128xf32, #tpu.memory_space<vmem>>, vector<8x128xf32>,
    return
  }
  func.func @transform_0(%arg0: i32) -> (i32, i32) {
    %c0_i32 = arith.constant 0 : i32
    %c0_i32_0 = arith.constant 0 : i32
    return %arg0, %c0_i32 : i32, i32
  }
  func.func @transform_1(%arg0: i32) -> (i32, i32) {
    %c0_i32 = arith.constant 0 : i32
    %c0_i32_0 = arith.constant 0 : i32
    %c0_i32_1 = arith.constant 0 : i32
    return %c0_i32, %c0_i32_0 : i32, i32
  }
  func.func @transform_2(%arg0: i32) -> (i32, i32) {
    %c0_i32 = arith.constant 0 : i32
    %c0_i32_0 = arith.constant 0 : i32
    %c0_i32_1 = arith.constant 0 : i32
    return %c0_i32, %c0_i32_0 : i32, i32
  }
  func.func @transform_3(%arg0: i32) -> (i32, i32) {
    %c0_i32 = arith.constant 0 : i32
    %c0_i32_0 = arith.constant 0 : i32
    %c0_i32_1 = arith.constant 0 : i32
    return %c0_i32, %c0_i32_0 : i32, i32
  }
  func.func @transform_4(%arg0: i32) -> (i32, i32) {
    %c0_i32 = arith.constant 0 : i32
    %c0_i32_0 = arith.constant 0 : i32
    %c0_i32_1 = arith.constant 0 : i32
    return %c0_i32, %c0_i32_0 : i32, i32
  }
  func.func @transform_5(%arg0: i32) -> (i32, i32) {
    %c0_i32 = arith.constant 0 : i32
    %c0_i32_0 = arith.constant 0 : i32
    %c0_i32_1 = arith.constant 0 : i32
    return %c0_i32, %c0_i32_0 : i32, i32
  }
  func.func @transform_6(%arg0: i32) -> (i32, i32) {
    %c0_i32 = arith.constant 0 : i32
    %c0_i32_0 = arith.constant 0 : i32
    %c0_i32_1 = arith.constant 0 : i32
    return %c0_i32, %c0_i32_0 : i32, i32
  }
  func.func @transform_7(%arg0: i32) -> (i32, i32) {
    %c0_i32 = arith.constant 0 : i32
    %c0_i32_0 = arith.constant 0 : i32
    return %arg0, %c0_i32 : i32, i32
  }
}

</mosaic_0001>

<bundles_post_ra>
// kernel: class_classifier_forward.1
= control target key start
LH: loop header
LB: loop body
LE: loop exit
PB: predicated region body
PF: predicated region fallthrough
CT: control target
= control target key end

     0   :  { %v1344_v2 = vmov 0   ;;  %s1770_s0 = inlined_call_operand.vmem [shape: bf16[8,128], index: 0, kind: input, shape index: {}]   ;;  %s1771_s1 = inlined_call_operand.vmem [shape: bf16[128,512], index: 1, kind: input, shape index: {}]   ;;  %s1772_s2 = inlined_call_operand.vmem [shape: f32[1,512], index: 2, kind: input, shape index: {}]   ;;  %s1773_s3 = inlined_call_operand.vmem [shape: bf16[512,256], index: 3, kind: input, shape index: {}]   ;;  %s1774_s4 = inlined_call_operand.vmem [shape: f32[1,256], index: 4, kind: input, shape index: {}]   ;;  %s1775_s5 = inlined_call_operand.vmem [shape: bf16[256,128], index: 5, kind: input, shape index: {}]   ;;  %s1776_s6 = inlined_call_operand.vmem [shape: f32[1,128], index: 6, kind: input, shape index: {}]   ;;  %s1777_s7 = inlined_call_operand.hbm [shape: f32[8,128], index: 7, kind: output, shape index: {}]  }
   0x1   :  { %v1160_v0 = vld [vmem:[%s1771_s1 + $0x4] ss:$16 sps:$4 sm:$0xff]   ;;  %v1162_v1 = vld [vmem:[%s1771_s1] ss:$16 sps:$4 sm:$0xff]   ;;  %275 = vmatprep.mubr.bf16.mxu1 %v1344_v2  ;;  %v1186_v22 = vld [vmem:[%s1771_s1 + $0xc] ss:$16 sps:$4 sm:$0xff]  }
   0x2   :  { %243 = vmatprep.subr.bf16.mxu1 %v1160_v0  ;;  %v1163_v3 = vld [vmem:[%s1771_s1 + $0x24] ss:$16 sps:$4 sm:$0xff]   ;;  %v1165_v4 = vld [vmem:[%s1771_s1 + $0x20] ss:$16 sps:$4 sm:$0xff]   ;;  %v1184_v26 = vld [vmem:[%s1771_s1 + $0x8] ss:$16 sps:$4 sm:$0xff]  }
   0x3   :  { %244 = vmatpush1.bf16.msra.mxu1 %v1162_v1  ;;  %v1166_v5 = vld [vmem:[%s1771_s1 + $0x44] ss:$16 sps:$4 sm:$0xff]   ;;  %v1168_v6 = vld [vmem:[%s1771_s1 + $0x40] ss:$16 sps:$4 sm:$0xff]   ;;  %v1189_v27 = vld [vmem:[%s1771_s1 + $0x2c] ss:$16 sps:$4 sm:$0xff]  }
   0x4   :  { %245 = vmatprep.subr.bf16.mxu1 %v1163_v3  ;;  %v1169_v7 = vld [vmem:[%s1771_s1 + $0x64] ss:$16 sps:$4 sm:$0xff]   ;;  %v1171_v8 = vld [vmem:[%s1771_s1 + $0x60] ss:$16 sps:$4 sm:$0xff]   ;;  %v1187_v30 = vld [vmem:[%s1771_s1 + $0x28] ss:$16 sps:$4 sm:$0xff]  }
   0x5   :  { %v1172_v9 = vld [vmem:[%s1771_s1 + $0x84] ss:$16 sps:$4 sm:$0xff]   ;;  %v1174_v10 = vld [vmem:[%s1771_s1 + $0x80] ss:$16 sps:$4 sm:$0xff]   ;;  %v1192_v31 = vld [vmem:[%s1771_s1 + $0x4c] ss:$16 sps:$4 sm:$0xff]  }
   0x6   :  { %v1175_v11 = vld [vmem:[%s1771_s1 + $0xa4] ss:$16 sps:$4 sm:$0xff]   ;;  %v1177_v12 = vld [vmem:[%s1771_s1 + $0xa0] ss:$16 sps:$4 sm:$0xff]   ;;  %v1190_v33 = vld [vmem:[%s1771_s1 + $0x48] ss:$16 sps:$4 sm:$0xff]  }
   0x7   :  { %246 = vmatpush1.bf16.msra.mxu1 %v1165_v4  ;;  %v1178_v13 = vld [vmem:[%s1771_s1 + $0xc4] ss:$16 sps:$4 sm:$0xff]   ;;  %v1180_v14 = vld [vmem:[%s1771_s1 + $0xc0] ss:$16 sps:$4 sm:$0xff]   ;;  %v1195_v35 = vld [vmem:[%s1771_s1 + $0x6c] ss:$16 sps:$4 sm:$0xff]  }
   0x8   :  { %247 = vmatprep.subr.bf16.mxu1 %v1166_v5  ;;  %v1208_v15 = vld [vmem:[%s1773_s3 + $0x4] ss:$8 sps:$4 sm:$0xff]   ;;  %v1210_v16 = vld [vmem:[%s1773_s3] ss:$8 sps:$4 sm:$0xff]   ;;  %v1211_v17 = vld [vmem:[%s1773_s3 + $0x14] ss:$8 sps:$4 sm:$0xff]  }
   0x9   :  { %v1181_v18 = vld [vmem:[%s1771_s1 + $0xe4] ss:$16 sps:$4 sm:$0xff]   ;;  %737 = vmatprep.subr.bf16.mxu0 %v1208_v15  ;;  %v1213_v19 = vld [vmem:[%s1773_s3 + $0x10] ss:$8 sps:$4 sm:$0xff]   ;;  %v1216_v23 = vld [vmem:[%s1773_s3 + $0x20] ss:$8 sps:$4 sm:$0xff]  }
   0xa   :  { %738 = vmatpush1.bf16.msra.mxu0 %v1210_v16  ;;  %v1214_v20 = vld [vmem:[%s1773_s3 + $0x24] ss:$8 sps:$4 sm:$0xff]   ;;  %v1183_v21 = vld [vmem:[%s1771_s1 + $0xe0] ss:$16 sps:$4 sm:$0xff]   ;;  %v1217_v25 = vld [vmem:[%s1773_s3 + $0x34] ss:$8 sps:$4 sm:$0xff]  }
   0xb   :  { %248 = vmatpush1.bf16.msra.mxu1 %v1168_v6  ;;  %739 = vmatprep.subr.bf16.mxu0 %v1211_v17  ;;  %v1458_v24 = vld [vmem:[%s1770_s0] sm:$0xf]  ;;  %v1219_v28 = vld [vmem:[%s1773_s3 + $0x30] ss:$8 sps:$4 sm:$0xff]   ;;  %v1220_v29 = vld [vmem:[%s1773_s3 + $0x44] ss:$8 sps:$4 sm:$0xff]  }
   0xc   :  { %249 = vmatprep.subr.bf16.mxu1 %v1169_v7  ;;  %v1222_v32 = vld [vmem:[%s1773_s3 + $0x40] ss:$8 sps:$4 sm:$0xff]   ;;  %v1223_v34 = vld [vmem:[%s1773_s3 + $0x54] ss:$8 sps:$4 sm:$0xff]   ;;  %v1225_v36 = vld [vmem:[%s1773_s3 + $0x50] ss:$8 sps:$4 sm:$0xff]  }
   0xd   :  { %v1226_v37 = vld [vmem:[%s1773_s3 + $0x64] ss:$8 sps:$4 sm:$0xff]   ;;  %v1193_v38 = vld [vmem:[%s1771_s1 + $0x68] ss:$16 sps:$4 sm:$0xff]   ;;  %v1229_v41 = vld [vmem:[%s1773_s3 + $0x74] ss:$8 sps:$4 sm:$0xff]  }
   0xe   :  { %740 = vmatpush1.bf16.msra.mxu0 %v1213_v19  ;;  %v1198_v39 = vld [vmem:[%s1771_s1 + $0x8c] ss:$16 sps:$4 sm:$0xff]   ;;  %v1228_v40 = vld [vmem:[%s1773_s3 + $0x60] ss:$8 sps:$4 sm:$0xff]   ;;  %v1231_v44 = vld [vmem:[%s1773_s3 + $0x70] ss:$8 sps:$4 sm:$0xff]  }
   0xf   :  { %250 = vmatpush1.bf16.msra.mxu1 %v1171_v8  ;;  %741 = vmatprep.subr.bf16.mxu0 %v1214_v20  ;;  %v1196_v42 = vld [vmem:[%s1771_s1 + $0x88] ss:$16 sps:$4 sm:$0xff]   ;;  %v1201_v43 = vld [vmem:[%s1771_s1 + $0xac] ss:$16 sps:$4 sm:$0xff]  }
  0x10   :  { %251 = vmatprep.subr.bf16.mxu1 %v1172_v9  ;;  %v1232_v45 = vld [vmem:[%s1773_s3 + $0x84] ss:$8 sps:$4 sm:$0xff]   ;;  %v1199_v46 = vld [vmem:[%s1771_s1 + $0xa8] ss:$16 sps:$4 sm:$0xff]   ;;  %v1235_v49 = vld [vmem:[%s1773_s3 + $0x94] ss:$8 sps:$4 sm:$0xff]  }
  0x11   :  { %v1204_v47 = vld [vmem:[%s1771_s1 + $0xcc] ss:$16 sps:$4 sm:$0xff]   ;;  %v1234_v48 = vld [vmem:[%s1773_s3 + $0x80] ss:$8 sps:$4 sm:$0xff]   ;;  %v1237_v52 = vld [vmem:[%s1773_s3 + $0x90] ss:$8 sps:$4 sm:$0xff]  }
  0x12   :  { %742 = vmatpush1.bf16.msra.mxu0 %v1216_v23  ;;  %v1202_v50 = vld [vmem:[%s1771_s1 + $0xc8] ss:$16 sps:$4 sm:$0xff]   ;;  %v1207_v51 = vld [vmem:[%s1771_s1 + $0xec] ss:$16 sps:$4 sm:$0xff]  }
  0x13   :  { %252 = vmatpush1.bf16.msra.mxu1 %v1174_v10  ;;  %743 = vmatprep.subr.bf16.mxu0 %v1217_v25  ;;  %v1238_v53 = vld [vmem:[%s1773_s3 + $0xa4] ss:$8 sps:$4 sm:$0xff]   ;;  %v1205_v54 = vld [vmem:[%s1771_s1 + $0xe8] ss:$16 sps:$4 sm:$0xff]   ;;  %v1241_v56 = vld [vmem:[%s1773_s3 + $0xb4] ss:$8 sps:$4 sm:$0xff]  }
  0x14   :  { %253 = vmatprep.subr.bf16.mxu1 %v1175_v11  ;;  %v1240_v55 = vld [vmem:[%s1773_s3 + $0xa0] ss:$8 sps:$4 sm:$0xff]  }
  0x16   :  { %744 = vmatpush1.bf16.msra.mxu0 %v1219_v28 }
  0x17   :  { %254 = vmatpush1.bf16.msra.mxu1 %v1177_v12  ;;  %745 = vmatprep.subr.bf16.mxu0 %v1220_v29 }
  0x18   :  { %255 = vmatprep.subr.bf16.mxu1 %v1178_v13 }
  0x1a   :  { %746 = vmatpush1.bf16.msra.mxu0 %v1222_v32 }
  0x1b   :  { %256 = vmatpush1.bf16.msra.mxu1 %v1180_v14  ;;  %747 = vmatprep.subr.bf16.mxu0 %v1223_v34 }
  0x1c   :  { %257 = vmatprep.subr.bf16.mxu1 %v1181_v18 }
  0x1e   :  { %748 = vmatpush1.bf16.msra.mxu0 %v1225_v36 }
  0x1f   :  { %258 = vmatpush1.bf16.msra.mxu1 %v1183_v21  ;;  %749 = vmatprep.subr.bf16.mxu0 %v1226_v37 }
  0x20   :  { %284 = vmatprep.subr.bf16.mxu1 %v1186_v22 }
  0x22   :  { %276 = vmatmul.mubr.bf16.vlgmr.msra.gmra.mrb[0].mxu1 %v1458_v24  ;;  %750 = vmatpush1.bf16.msra.mxu0 %v1228_v40 }
  0x23   :  { %285 = vmatpush1.bf16.msra.mxu1 %v1184_v26  ;;  %316 = vmatprep.mubr.bf16.mxu1 %v1344_v2 }
  0x24   :  { %286 = vmatprep.subr.bf16.mxu1 %v1189_v27  ;;  %751 = vmatprep.subr.bf16.mxu0 %v1229_v41 }
  0x26   :  { %752 = vmatpush1.bf16.msra.mxu0 %v1231_v44 }
  0x27   :  { %287 = vmatpush1.bf16.msra.mxu1 %v1187_v30  ;;  %753 = vmatprep.subr.bf16.mxu0 %v1232_v45 }
  0x28   :  { %288 = vmatprep.subr.bf16.mxu1 %v1192_v31 }
  0x2a   :  { %754 = vmatpush1.bf16.msra.mxu0 %v1234_v48 }
  0x2b   :  { %289 = vmatpush1.bf16.msra.mxu1 %v1190_v33  ;;  %755 = vmatprep.subr.bf16.mxu0 %v1235_v49 }
  0x2c   :  { %290 = vmatprep.subr.bf16.mxu1 %v1195_v35 }
  0x2e   :  { %756 = vmatpush1.bf16.msra.mxu0 %v1237_v52 }
  0x2f   :  { %291 = vmatpush1.bf16.msra.mxu1 %v1193_v38  ;;  %757 = vmatprep.subr.bf16.mxu0 %v1238_v53 }
  0x30   :  { %292 = vmatprep.subr.bf16.mxu1 %v1198_v39 }
  0x33   :  { %293 = vmatpush1.bf16.msra.mxu1 %v1196_v42 }
  0x34   :  { %294 = vmatprep.subr.bf16.mxu1 %v1201_v43 }
  0x37   :  { %295 = vmatpush1.bf16.msra.mxu1 %v1199_v46 }
  0x38   :  { %296 = vmatprep.subr.bf16.mxu1 %v1204_v47 }
  0x3b   :  { %297 = vmatpush1.bf16.msra.mxu1 %v1202_v50 }
  0x3c   :  { %298 = vmatprep.subr.bf16.mxu1 %v1207_v51 }
  0x3f   :  { %299 = vmatpush1.bf16.msra.mxu1 %v1205_v54 }
  0x40   :  { %12 = vsyncpa [#allocation3], 0  ;;  %758 = vmatpush1.bf16.msra.mxu0 %v1240_v55  ;;  %v1243_v57 = vld [vmem:[%s1773_s3 + $0xb0] ss:$8 sps:$4 sm:$0xff]   ;;  %v1244_v58 = vld [vmem:[%s1773_s3 + $0xc4] ss:$8 sps:$4 sm:$0xff]   ;;  %v63_v15 = vlaneseq }
  0x41   :  { %759 = vmatprep.subr.bf16.mxu0 %v1241_v56  ;;  %v1246_v59 = vld [vmem:[%s1773_s3 + $0xc0] ss:$8 sps:$4 sm:$0xff]   ;;  %v1247_v60 = vld [vmem:[%s1773_s3 + $0xd4] ss:$8 sps:$4 sm:$0xff]   ;;  %v1249_v61 = vld [vmem:[%s1773_s3 + $0xd0] ss:$8 sps:$4 sm:$0xff]  }
  0x42   :  { %317 = vmatmul.mubr.bf16.vlgmr.msra.gmra.mrb[4].mxu1 %v1458_v24  ;;  %v1250_v62 = vld [vmem:[%s1773_s3 + $0xe4] ss:$8 sps:$4 sm:$0xff]   ;;  %v1252_v63 = vld [vmem:[%s1773_s3 + $0xe0] ss:$8 sps:$4 sm:$0xff]   ;;  %v1253_v0 = vld [vmem:[%s1773_s3 + $0xf4] ss:$8 sps:$4 sm:$0xff]  }
  0x43   :  { %v1255_v1 = vld [vmem:[%s1773_s3 + $0xf0] ss:$8 sps:$4 sm:$0xff]   ;;  %v1258_v2 = vld [vmem:[%s1773_s3 + $0x104] ss:$8 sps:$4 sm:$0xff]   ;;  %v1624_v16 = vshrl.u32 %v63_v15, 7  ;;  %s1345_s8 = smov [#allocation2]  }
  0x44   :  { %760 = vmatpush1.bf16.msra.mxu0 %v1243_v57  ;;  %v1304_v3 = vld [vmem:[%s1775_s5 + $0x40] sm:$0xff]   ;;  %v1306_v5 = vld [vmem:[%s1775_s5 + $0x48] sm:$0xff]   ;;  %v1308_v7 = vld [vmem:[%s1775_s5 + $0x50] sm:$0xff]   ;;  %s1009_s9 = sshll.u32 %s1345_s8, 4  ;;  %s1010_s9 = int_to_ptr.vmem [resolvable:$true] %s1009_s9 }
  0x45   :  { %761 = vmatprep.subr.bf16.mxu0 %v1244_v58  ;;  %v1305_v4 = vld [vmem:[%s1775_s5] sm:$0xff]   ;;  %1130 = vmatprep.subr.bf16.mxu1 %v1304_v3  ;;  %v1307_v6 = vld [vmem:[%s1775_s5 + $0x8] sm:$0xff]   ;;  %v1309_v8 = vld [vmem:[%s1775_s5 + $0x10] sm:$0xff]   ;;  %v65_v17 = vsub.s32 0, %v1624_v16  ;;  %v69_v19 = vsub.s32 1, %v1624_v16  ;;  %v77_v44 = vsub.s32 3, %v1624_v16  ;;  %p1325_p1 = scmp.lt.s32.totalorder %s1010_s9, %s1010_s9 }
  0x46   :  { %1131 = vmatpush3.bf16.msra.mxu1 %v1305_v4  ;;  %v1310_v9 = vld [vmem:[%s1775_s5 + $0x58] sm:$0xff]   ;;  %v1312_v11 = vld [vmem:[%s1775_s5 + $0x60] sm:$0xff]   ;;  %v1314_v13 = vld [vmem:[%s1775_s5 + $0x68] sm:$0xff]   ;;  %v73_v4 = vsub.s32 2, %v1624_v16  ;;  %s1320_s10 = scalar_lea.vmem %s1010_s9, 128 }
  0x47   :  { %1132 = vmatprep.subr.bf16.mxu1 %v1306_v5  ;;  %v1311_v10 = vld [vmem:[%s1775_s5 + $0x18] sm:$0xff]   ;;  %v1313_v12 = vld [vmem:[%s1775_s5 + $0x20] sm:$0xff]   ;;  %v1315_v14 = vld [vmem:[%s1775_s5 + $0x28] sm:$0xff]   ;;  %p1321_p0 = scmp.ne.s32.totalorder %s1010_s9, %s1320_s10  ;;  %p1326_p2 = scmp.lt.s32.totalorder %s1320_s10, %s1320_s10 }
  0x48   :  { %762 = vmatpush1.bf16.msra.mxu0 %v1246_v59  ;;  %v1630_v18 = vld [vmem:[%s1772_s2] sm:$0xf]  ;;  %v1261_v35 = vld [vmem:[%s1773_s3 + $0x114] ss:$8 sps:$4 sm:$0xff]   ;;  %v1259_v36 = vld [vmem:[%s1773_s3 + $0x110] ss:$8 sps:$4 sm:$0xff]  }
  0x49   :  { %763 = vmatprep.subr.bf16.mxu0 %v1247_v60  ;;  %v66_v20 = vrot.slane %v1630_v18, %v65_v17  ;;  %v70_v21 = vrot.slane %v1630_v18, %v69_v19  ;;  %v1256_v33 = vld [vmem:[%s1773_s3 + $0x100] ss:$8 sps:$4 sm:$0xff]   ;;  %v1264_v37 = vld [vmem:[%s1773_s3 + $0x124] ss:$8 sps:$4 sm:$0xff]   ;;  %v1267_v39 = vld [vmem:[%s1773_s3 + $0x134] ss:$8 sps:$4 sm:$0xff]   ;;  %v78_v47 = vrot.slane %v1630_v18, %v77_v44  ;;  %p1327_p3 = por %p1326_p2, %p1325_p1 }
  0x4a   :  { %1133 = vmatpush3.bf16.msra.mxu1 %v1307_v6  ;;  %v1262_v38 = vld [vmem:[%s1773_s3 + $0x120] ss:$8 sps:$4 sm:$0xff]   ;;  %v1265_v40 = vld [vmem:[%s1773_s3 + $0x130] ss:$8 sps:$4 sm:$0xff]   ;;  %v1270_v41 = vld [vmem:[%s1773_s3 + $0x144] ss:$8 sps:$4 sm:$0xff]  }
  0x4b   :  { %1134 = vmatprep.subr.bf16.mxu1 %v1308_v7  ;;  %v1268_v42 = vld [vmem:[%s1773_s3 + $0x140] ss:$8 sps:$4 sm:$0xff]   ;;  %v1273_v43 = vld [vmem:[%s1773_s3 + $0x154] ss:$8 sps:$4 sm:$0xff]   ;;  %v1271_v45 = vld [vmem:[%s1773_s3 + $0x150] ss:$8 sps:$4 sm:$0xff]   ;;  %v74_v7 = vrot.slane %v1630_v18, %v73_v4  ;;  %p1328_p4 = pnand %p1327_p3, %p1321_p0 }
  0x4c   :  { %764 = vmatpush1.bf16.msra.mxu0 %v1249_v61  ;;  %v1276_v46 = vld [vmem:[%s1773_s3 + $0x164] ss:$8 sps:$4 sm:$0xff]   ;;  %v1274_v48 = vld [vmem:[%s1773_s3 + $0x160] ss:$8 sps:$4 sm:$0xff]   ;;  %v1279_v49 = vld [vmem:[%s1773_s3 + $0x174] ss:$8 sps:$4 sm:$0xff]  }
  0x4d   :  { %765 = vmatprep.subr.bf16.mxu0 %v1250_v62  ;;  %v1277_v54 = vld [vmem:[%s1773_s3 + $0x170] ss:$8 sps:$4 sm:$0xff]   ;;  %v1282_v56 = vld [vmem:[%s1773_s3 + $0x184] ss:$8 sps:$4 sm:$0xff]   ;;  %v1280_v59 = vld [vmem:[%s1773_s3 + $0x180] ss:$8 sps:$4 sm:$0xff]  }
  0x4e   :  { %1135 = vmatpush3.bf16.msra.mxu1 %v1309_v8  ;;  %v1285_v61 = vld [vmem:[%s1773_s3 + $0x194] ss:$8 sps:$4 sm:$0xff]   ;;  %v1283_v62 = vld [vmem:[%s1773_s3 + $0x190] ss:$8 sps:$4 sm:$0xff]   ;;  %v1294_v3 = vld [vmem:[%s1773_s3 + $0x1c4] ss:$8 sps:$4 sm:$0xff]  }
  0x4f   :  { %1136 = vmatprep.subr.bf16.mxu1 %v1310_v9  ;;  %v1292_v5 = vld [vmem:[%s1773_s3 + $0x1c0] ss:$8 sps:$4 sm:$0xff]   ;;  %v1297_v6 = vld [vmem:[%s1773_s3 + $0x1d4] ss:$8 sps:$4 sm:$0xff]   ;;  %v1295_v8 = vld [vmem:[%s1773_s3 + $0x1d0] ss:$8 sps:$4 sm:$0xff]  }
  0x50   :  { %766 = vmatpush1.bf16.msra.mxu0 %v1252_v63  ;;  %v1288_v63 = vld [vmem:[%s1773_s3 + $0x1a4] ss:$8 sps:$4 sm:$0xff]   ;;  %v1113_v16 = vld [vmem:[%s1776_s6] ss:$0 sm:$0xff] }
  0x51   :  { %767 = vmatprep.subr.bf16.mxu0 %v1253_v0  ;;  %v1286_v0 = vld [vmem:[%s1773_s3 + $0x1a0] ss:$8 sps:$4 sm:$0xff]   ;;  %v1300_v9 = vld [vmem:[%s1773_s3 + $0x1e4] ss:$8 sps:$4 sm:$0xff]  }
  0x52   :  { %1137 = vmatpush3.bf16.msra.mxu1 %v1311_v10 }
  0x53   :  { %1138 = vmatprep.subr.bf16.mxu1 %v1312_v11  ;;  %v1298_v11 = vld [vmem:[%s1773_s3 + $0x1e0] ss:$8 sps:$4 sm:$0xff]  }
  0x54   :  { %768 = vmatpush1.bf16.msra.mxu0 %v1255_v1  ;;  %v1291_v1 = vld [vmem:[%s1773_s3 + $0x1b4] ss:$8 sps:$4 sm:$0xff]  }
  0x55   :  { %778 = vmatprep.subr.bf16.mxu0 %v1258_v2  ;;  %v1289_v2 = vld [vmem:[%s1773_s3 + $0x1b0] ss:$8 sps:$4 sm:$0xff]  }
  0x56   :  { %1139 = vmatpush3.bf16.msra.mxu1 %v1313_v12  ;;  %v1303_v12 = vld [vmem:[%s1773_s3 + $0x1f4] ss:$8 sps:$4 sm:$0xff]  }
  0x57   :  { %1140 = vmatprep.subr.bf16.mxu1 %v1314_v13 }
  0x5a   :  { %1141 = vmatpush3.bf16.msra.mxu1 %v1315_v14  ;;  %v1301_v14 = vld [vmem:[%s1773_s3 + $0x1f0] ss:$8 sps:$4 sm:$0xff]  }
  0xf5   :  { %v277_v22 = vpop.f32.mrb[0].mxu1 }
  0xf6   :  { %v278_v23 = vadd.f32 %v277_v22, %v66_v20  ;;  %v279_v24 = vpop.f32.mrb[1].mxu1  ;;  %v1316_v20 = vld [vmem:[%s1775_s5 + $0x70] sm:$0xff]   ;;  %v1318_v22 = vld [vmem:[%s1775_s5 + $0x78] sm:$0xff]  }
  0xf7   :  { %v280_v25 = vadd.f32 %v279_v24, %v70_v21  ;;  %v281_v26 = vpop.f32.mrb[2].mxu1  ;;  %v1317_v21 = vld [vmem:[%s1775_s5 + $0x30] sm:$0xff]   ;;  %1142 = vmatprep.subr.bf16.mxu1 %v1316_v20  ;;  %v405_v24 = vld [vmem:[%s1774_s4] sm:$0x3] }
  0xf8   :  { %vm325_vm0 = vcmp.gt.f32.partialorder %v278_v23, 0.0  ;;  %v329_v27 = vmul.f32 0.2, %v278_v23  ;;  %v282_v28 = vpop.f32.mrb[3].mxu1  ;;  %1143 = vmatpush3.bf16.msra.mxu1 %v1317_v21  ;;  %v414_v26 = vrot.slane %v405_v24, %v69_v19 }
  0xf9   :  { %vm326_vm1 = vcmp.gt.f32.partialorder %v280_v25, 0.0  ;;  %v330_v29 = vmul.f32 0.2, %v280_v25  ;;  %1144 = vmatprep.subr.bf16.mxu1 %v1318_v22 }
  0xfa   :  { %v333_v30 = vsel %vm325_vm0, %v278_v23, %v329_v27  ;;  %v1319_v23 = vld [vmem:[%s1775_s5 + $0x38] sm:$0xff]  }
  0xfb   :  { %v334_v31 = vsel %vm326_vm1, %v280_v25, %v330_v29  ;;  %v337_v34 = vpack.c.bf16 %v333_v30, %v333_v30  ;;  %v410_v25 = vrot.slane %v405_v24, %v65_v17 }
  0xfc   :  { %v338_v32 = vpack.c.bf16 %v334_v31, %v334_v31  ;;  %1145 = vmatpush3.bf16.msra.mxu1 %v1319_v23 }
  0xfe   :  { %769 = vmatprep.mubr.bf16.mxu0 %v338_v32 }
  0xff   :  { %770 = vmatmul.mubr.bf16.vlgmr.msra.gmra.mrb[0].mxu0 %v337_v34 }
 0x100   :  { %779 = vmatpush1.bf16.msra.mxu0 %v1256_v33 }
 0x101   :  { %780 = vmatprep.subr.bf16.mxu0 %v1261_v35 }
 0x104   :  { %781 = vmatpush1.bf16.msra.mxu0 %v1259_v36 }
 0x105   :  { %782 = vmatprep.subr.bf16.mxu0 %v1264_v37 }
 0x108   :  { %783 = vmatpush1.bf16.msra.mxu0 %v1262_v38 }
 0x109   :  { %784 = vmatprep.subr.bf16.mxu0 %v1267_v39 }
 0x10c   :  { %785 = vmatpush1.bf16.msra.mxu0 %v1265_v40 }
 0x10d   :  { %786 = vmatprep.subr.bf16.mxu0 %v1270_v41 }
 0x110   :  { %787 = vmatpush1.bf16.msra.mxu0 %v1268_v42 }
 0x111   :  { %788 = vmatprep.subr.bf16.mxu0 %v1273_v43 }
 0x114   :  { %789 = vmatpush1.bf16.msra.mxu0 %v1271_v45 }
 0x115   :  { %790 = vmatprep.subr.bf16.mxu0 %v1276_v46  ;;  %v318_v50 = vpop.f32.mrb[4].mxu1 }
 0x116   :  { %v320_v51 = vpop.f32.mrb[5].mxu1  ;;  %v319_v10 = vadd.f32 %v318_v50, %v74_v7 }
 0x117   :  { %v321_v52 = vadd.f32 %v320_v51, %v78_v47  ;;  %v322_v53 = vpop.f32.mrb[6].mxu1 }
 0x118   :  { %791 = vmatpush1.bf16.msra.mxu0 %v1274_v48  ;;  %v323_v55 = vpop.f32.mrb[7].mxu1  ;;  %v331_v13 = vmul.f32 0.2, %v319_v10  ;;  %vm327_vm3 = vcmp.gt.f32.partialorder %v319_v10, 0.0 }
 0x119   :  { %792 = vmatprep.subr.bf16.mxu0 %v1279_v49  ;;  %vm328_vm2 = vcmp.gt.f32.partialorder %v321_v52, 0.0  ;;  %v332_v57 = vmul.f32 0.2, %v321_v52 }
 0x11a   :  { %v335_v15 = vsel %vm327_vm3, %v319_v10, %v331_v13 }
 0x11b   :  { %v336_v58 = vsel %vm328_vm2, %v321_v52, %v332_v57  ;;  %v339_v18 = vpack.c.bf16 %v335_v15, %v335_v15 }
 0x11c   :  { %793 = vmatpush1.bf16.msra.mxu0 %v1277_v54  ;;  %v340_v60 = vpack.c.bf16 %v336_v58, %v336_v58 }
 0x11d   :  { %794 = vmatprep.subr.bf16.mxu0 %v1282_v56 }
 0x11e   :  { %810 = vmatprep.mubr.bf16.mxu0 %v340_v60 }
 0x120   :  { %795 = vmatpush1.bf16.msra.mxu0 %v1280_v59 }
 0x121   :  { %796 = vmatprep.subr.bf16.mxu0 %v1285_v61 }
 0x124   :  { %797 = vmatpush1.bf16.msra.mxu0 %v1283_v62 }
 0x125   :  { %798 = vmatprep.subr.bf16.mxu0 %v1288_v63 }
 0x128   :  { %799 = vmatpush1.bf16.msra.mxu0 %v1286_v0 }
 0x129   :  { %800 = vmatprep.subr.bf16.mxu0 %v1291_v1 }
 0x12c   :  { %801 = vmatpush1.bf16.msra.mxu0 %v1289_v2 }
 0x12d   :  { %802 = vmatprep.subr.bf16.mxu0 %v1294_v3 }
 0x130   :  { %803 = vmatpush1.bf16.msra.mxu0 %v1292_v5 }
 0x131   :  { %804 = vmatprep.subr.bf16.mxu0 %v1297_v6 }
 0x134   :  { %805 = vmatpush1.bf16.msra.mxu0 %v1295_v8 }
 0x135   :  { %806 = vmatprep.subr.bf16.mxu0 %v1300_v9 }
 0x138   :  { %807 = vmatpush1.bf16.msra.mxu0 %v1298_v11 }
 0x139   :  { %808 = vmatprep.subr.bf16.mxu0 %v1303_v12 }
 0x13c   :  { %809 = vmatpush1.bf16.msra.mxu0 %v1301_v14 }
 0x13f   :  { %811 = vmatmul.mubr.bf16.vlgmr.msra.gmra.mrb[0].mxu0 %v339_v18 }
 0x212   :  { %v812_v27 = vpop.f32.mrb[0].mxu0 }
 0x213   :  { %v1152_v28 = vadd.f32 %v812_v27, %v410_v25  ;;  %v814_v29 = vpop.f32.mrb[1].mxu0 }
 0x214   :  { %v1153_v30 = vadd.f32 %v814_v29, %v414_v26  ;;  %v816_v31 = vpop.f32.mrb[2].mxu0 }
 0x215   :  { %vm819_vm4 = vcmp.gt.f32.partialorder %v1152_v28, 0.0  ;;  %v821_v32 = vmul.f32 0.2, %v1152_v28  ;;  %v817_v33 = vpop.f32.mrb[3].mxu0 }
 0x216   :  { %vm820_vm5 = vcmp.gt.f32.partialorder %v1153_v30, 0.0  ;;  %v822_v34 = vmul.f32 0.2, %v1153_v30 }
 0x217   :  { %v823_v35 = vsel %vm819_vm4, %v1152_v28, %v821_v32 }
 0x218   :  { %v824_v36 = vsel %vm820_vm5, %v1153_v30, %v822_v34  ;;  %v825_v38 = vpack.c.bf16 %v823_v35, %v823_v35 }
 0x219   :  { %v826_v37 = vpack.c.bf16 %v824_v36, %v824_v36 }
 0x21b   :  { %994 = vmatprep.mubr.bf16.mxu1 %v826_v37 }
 0x21c   :  { %995 = vmatmul.mubr.bf16.vlgmr.msra.gmra.mrb[8].mxu1 %v825_v38 }
 0x2ef   :  { %v1146_v17 = vpop.f32.mrb[8].mxu1 }
 0x2f0   :  { %v1147_v39 = vpop.f32.mrb[9].mxu1 }
 0x2f1   :  { %v1148_v19 = vadd.f32 %v1147_v39, %v1146_v17  ;;  %v1149_v40 = vpop.f32.mrb[10].mxu1 }
 0x2f2   :  { %v1150_v41 = vpop.f32.mrb[11].mxu1 }
 0x2f3   :  { %v997_v42 = vadd.f32 %v1148_v19, %v1113_v16 }
 0x2f5   :  { %1002 = vst [vmem:[#allocation2] sm:$0xff] %v997_v42 }
 0x2f6   :  { %1331 = shalt.err (!%p1328_p4)
}
 0x2f7   :  { %s1332_s12 = scalar_lea.hbm %s1777_s7, 128 }
 0x2f8   :  { %p1333_p5 = scmp.ne.s32.totalorder %s1777_s7, %s1332_s12  ;;  %p1336_p6 = scmp.lt.u32.totalorder %s1332_s12, %s1777_s7 }
 0x2fa   :  { %p1338_p7 = pnand %p1336_p6, %p1333_p5 }
 0x2fc   :  { %1341 = shalt.err (!%p1338_p7)
}
 0x2fd   :  { %1012 = dma.vmem_to_hbm [thread:$0]  %s1010_s9, 128, %s1777_s7, [#allocation3]  }
 0x2fe   :  { %1342 = dma.done.wait [#allocation3], 128  }
 0x2ff   :  { %1343 = vsyncadd [#allocation3], 4294967168 }
 0x300   :  { %1016 = vsyncpa [#allocation3], 1 }

</bundles_post_ra>
